<compile_context>
chip_gen: v7x
topology: tpu7x:2x2x1
jax: 0.10.0
libtpu: 0.0.40
codegen_flags: <defaults>
</compile_context>

<pallas_src>
import functools

import jax
import jax.numpy as jnp
from jax.experimental import pallas as pl
from jax.experimental.pallas import tpu as pltpu


# ----------------------------- constants ----------------------------------- #

ATOM_VOCABS = (13, 7)    # two categorical atom features
BOND_VOCABS = (5, 3)     # two categorical bond features
BN_EPS = 1e-5
D_PAD = 128              # padded node-feature width (lane-dense)
H_PAD = 128              # padded MLP hidden width (lane-dense); must equal D_PAD
                         # (the eps row of the shift slab broadcasts over both)


# ----------------------------- Pallas kernel ------------------------------- #

def _gnn_fused_kernel(src_oh_ref, dst_oh_ref, h0_ref, eemb_ref,
                      w1_ref, w2_ref, sh_ref, out_ref):
    """One grid step == one GIN layer.  h lives in the resident output VMEM block.

    src_oh_ref : [E, N]  bf16   one-hot gather operator (layer-invariant, resident)
    dst_oh_ref : [N, E]  bf16   one-hot scatter-add operator (layer-invariant, resident)
    h0_ref     : [N, D]  f32    AtomEncoder output (only read at layer 0)
    eemb_ref   : [E, D]  f32    BondEncoder output of the current layer
    w1_ref     : [D, H]  bf16   Linear1 weights with BN1 folded in
    w2_ref     : [H, D]  bf16   Linear2 weights with outer-BN folded in
    sh_ref     : [8, H]  f32    row0 = shift1, row1 = shift2, row2 = (1 + eps)
    out_ref    : [N, D]  f32    resident node features; written back to HBM once
    """
    l = pl.program_id(0)

    @pl.when(l == 0)
    def _():
        out_ref[...] = h0_ref[...]

    h = out_ref[...]                                        # [N, D] f32

    # message: relu(h[src] + bond_emb); gather expressed as one-hot @ h (bf16 MXU)
    x_src = jnp.dot(src_oh_ref[...], h.astype(jnp.bfloat16),
                    preferred_element_type=jnp.float32)     # [E, D]
    msg = jnp.maximum(x_src + eemb_ref[...], 0.0)

    # aggregate: scatter-add over destination nodes as one-hot @ msg (bf16 MXU)
    aggr = jnp.dot(dst_oh_ref[...], msg.astype(jnp.bfloat16),
                   preferred_element_type=jnp.float32)      # [N, D]

    # GIN update: relu(BN2(W2 relu(BN1(W1 ((1+eps)h + aggr)))))  -- BN folded in W/shift
    one_plus_eps = sh_ref[2:3, :]                           # [1, H] (same value all lanes)
    g = one_plus_eps * h + aggr
    h1 = jnp.maximum(
        jnp.dot(g.astype(jnp.bfloat16), w1_ref[...],
                preferred_element_type=jnp.float32) + sh_ref[0:1, :], 0.0)
    h_new = jnp.maximum(
        jnp.dot(h1.astype(jnp.bfloat16), w2_ref[...],
                preferred_element_type=jnp.float32) + sh_ref[1:2, :], 0.0)

    out_ref[...] = h_new


# ------------------------------ JAX glue ------------------------------------ #

def _round_up(n, m):
    return ((n + m - 1) // m) * m


def _pad_last(a, target):
    pad = target - a.shape[-1]
    return jnp.pad(a, [(0, 0)] * (a.ndim - 1) + [(0, pad)])


def _pad_rows(a, target_rows):
    pad = target_rows - a.shape[0]
    return jnp.pad(a, [(0, pad)] + [(0, 0)] * (a.ndim - 1))


def _encode(tables, feats):
    out = jnp.zeros((feats.shape[0], tables[0].shape[1]), jnp.float32)
    for f, tab in enumerate(tables):
        out = out + jnp.take(tab, feats[:, f], axis=0)
    return out


def make_params(key, num_layers, emb_dim):
    """Raw (torch-like) parameters, used by the pure-f32 reference."""
    hid = 2 * emb_dim
    keys = iter(jax.random.split(key, 2 + num_layers * 16))
    params = {"atom_tables": [jax.random.normal(next(keys), (v, emb_dim), jnp.float32) * 0.1
                              for v in ATOM_VOCABS]}
    layers = []
    for _ in range(num_layers):
        lp = {}
        lp["bond_tables"] = [jax.random.normal(next(keys), (v, emb_dim), jnp.float32) * 0.1
                             for v in BOND_VOCABS]
        lp["eps"] = jnp.float32(0.0)                       # torch init: eps = 0
        lp["w1"] = jax.random.normal(next(keys), (emb_dim, hid), jnp.float32) * 0.1
        lp["b1"] = jax.random.normal(next(keys), (hid,), jnp.float32) * 0.1
        lp["bn1_g"] = 1.0 + 0.1 * jax.random.normal(next(keys), (hid,), jnp.float32)
        lp["bn1_b"] = 0.1 * jax.random.normal(next(keys), (hid,), jnp.float32)
        lp["bn1_rm"] = 0.1 * jax.random.normal(next(keys), (hid,), jnp.float32)
        lp["bn1_rv"] = 0.5 + jax.random.uniform(next(keys), (hid,), jnp.float32)
        lp["w2"] = jax.random.normal(next(keys), (hid, emb_dim), jnp.float32) * 0.1
        lp["b2"] = jax.random.normal(next(keys), (emb_dim,), jnp.float32) * 0.1
        lp["bn2_g"] = 1.0 + 0.1 * jax.random.normal(next(keys), (emb_dim,), jnp.float32)
        lp["bn2_b"] = 0.1 * jax.random.normal(next(keys), (emb_dim,), jnp.float32)
        lp["bn2_rm"] = 0.1 * jax.random.normal(next(keys), (emb_dim,), jnp.float32)
        lp["bn2_rv"] = 0.5 + jax.random.uniform(next(keys), (emb_dim,), jnp.float32)
        layers.append(lp)
    params["layers"] = layers
    return params


def pack_params(params, emb_dim):
    """Fold BN into the Linear weights, pad to lane-dense 128 widths, stack over layers,
    and pack the small per-layer vectors into one [L, 8, 128] slab."""
    hid = 2 * emb_dim
    w1s, w2s, shs = [], [], []
    for lp in params["layers"]:
        sc1 = lp["bn1_g"] / jnp.sqrt(lp["bn1_rv"] + BN_EPS)
        sh1 = (lp["b1"] - lp["bn1_rm"]) * sc1 + lp["bn1_b"]
        w1f = lp["w1"] * sc1[None, :]
        sc2 = lp["bn2_g"] / jnp.sqrt(lp["bn2_rv"] + BN_EPS)
        sh2 = (lp["b2"] - lp["bn2_rm"]) * sc2 + lp["bn2_b"]
        w2f = lp["w2"] * sc2[None, :]

        w1p = jnp.zeros((D_PAD, H_PAD), jnp.float32).at[:emb_dim, :hid].set(w1f)
        w2p = jnp.zeros((H_PAD, D_PAD), jnp.float32).at[:hid, :emb_dim].set(w2f)
        sh = jnp.zeros((8, H_PAD), jnp.float32)
        sh = sh.at[0, :hid].set(sh1)
        sh = sh.at[1, :emb_dim].set(sh2)
        sh = sh.at[2, :].set(1.0 + lp["eps"])

        w1s.append(w1p.astype(jnp.bfloat16))
        w2s.append(w2p.astype(jnp.bfloat16))
        shs.append(sh)
    return {
        "atom_tables": params["atom_tables"],
        "bond_tables": [lp["bond_tables"] for lp in params["layers"]],
        "w1_all": jnp.stack(w1s),        # [L, D_PAD, H_PAD] bf16
        "w2_all": jnp.stack(w2s),        # [L, H_PAD, D_PAD] bf16
        "shifts_all": jnp.stack(shs),    # [L, 8, H_PAD]     f32
    }


@functools.partial(jax.jit, static_argnums=(4,))
def gnn_forward(packed, x_int, edge_index, edge_attr, emb_dim):
    """JK='last' GNN forward: encoders + one fused Pallas call over all layers."""
    N = x_int.shape[0]
    E = edge_index.shape[1]
    N_pad = _round_up(N, 8)
    E_pad = _round_up(E, 8)

    src = edge_index[0].astype(jnp.int32)
    dst = edge_index[1].astype(jnp.int32)
    # Pad edges with -1 so the padded one-hot rows/columns are all-zero (no contribution).
    src_p = jnp.pad(src, (0, E_pad - E), constant_values=-1)
    dst_p = jnp.pad(dst, (0, E_pad - E), constant_values=-1)

    # Layer-invariant one-hot gather/scatter operators, built once (exact in bf16).
    node_ids = jnp.arange(N_pad, dtype=jnp.int32)
    src_oh = (src_p[:, None] == node_ids[None, :]).astype(jnp.bfloat16)   # [E_pad, N_pad]
    dst_oh = (node_ids[:, None] == dst_p[None, :]).astype(jnp.bfloat16)   # [N_pad, E_pad]

    # AtomEncoder once; BondEncoder of every layer stacked so the kernel streams them.
    h0 = _pad_rows(_pad_last(_encode(packed["atom_tables"], x_int), D_PAD), N_pad)
    eemb_all = jnp.stack(
        [_pad_rows(_pad_last(_encode(bt, edge_attr), D_PAD), E_pad)
         for bt in packed["bond_tables"]], axis=0)                        # [L, E_pad, D_PAD]

    L = packed["w1_all"].shape[0]

    out = pl.pallas_call(
        _gnn_fused_kernel,
        out_shape=jax.ShapeDtypeStruct((N_pad, D_PAD), jnp.float32),
        grid_spec=pltpu.PrefetchScalarGridSpec(
            num_scalar_prefetch=0,
            grid=(L,),
            in_specs=[
                pl.BlockSpec((E_pad, N_pad), lambda l: (0, 0)),              # src_oh (resident)
                pl.BlockSpec((N_pad, E_pad), lambda l: (0, 0)),              # dst_oh (resident)
                pl.BlockSpec((N_pad, D_PAD), lambda l: (0, 0)),              # h0 (resident)
                pl.BlockSpec((None, E_pad, D_PAD), lambda l: (l, 0, 0)),     # eemb of layer l
                pl.BlockSpec((None, D_PAD, H_PAD), lambda l: (l, 0, 0)),     # w1 of layer l
                pl.BlockSpec((None, H_PAD, D_PAD), lambda l: (l, 0, 0)),     # w2 of layer l
                pl.BlockSpec((None, 8, H_PAD), lambda l: (l, 0, 0)),         # shifts/eps slab
            ],
            out_specs=pl.BlockSpec((N_pad, D_PAD), lambda l: (0, 0)),        # resident h
        ),
        compiler_params=pltpu.CompilerParams(dimension_semantics=("arbitrary",)),
    )(src_oh, dst_oh, h0, eemb_all, packed["w1_all"], packed["w2_all"],
      packed["shifts_all"])
    return out[:N, :emb_dim]


# ------------------------------ references ---------------------------------- #

def gnn_forward_ref(params, x_int, edge_index, edge_attr):
    """Pure-f32 JAX reference with explicit (eval-mode) BatchNorm — module semantics."""
    src, dst = edge_index[0], edge_index[1]
    h = _encode(params["atom_tables"], x_int)
    for lp in params["layers"]:
        eemb = _encode(lp["bond_tables"], edge_attr)
        msg = jnp.maximum(h[src] + eemb, 0.0)
        aggr = jnp.zeros_like(h).at[dst].add(msg)
        g = (1.0 + lp["eps"]) * h + aggr
        z1 = g @ lp["w1"] + lp["b1"]
        z1 = (z1 - lp["bn1_rm"]) / jnp.sqrt(lp["bn1_rv"] + BN_EPS) * lp["bn1_g"] + lp["bn1_b"]
        h1 = jnp.maximum(z1, 0.0)
        z2 = h1 @ lp["w2"] + lp["b2"]
        z2 = (z2 - lp["bn2_rm"]) / jnp.sqrt(lp["bn2_rv"] + BN_EPS) * lp["bn2_g"] + lp["bn2_b"]
        h = jnp.maximum(z2, 0.0)
    return h


def gnn_forward_bf16_ref(packed, x_int, edge_index, edge_attr, emb_dim):
    """Reference that mirrors the kernel's bf16-operand / f32-accumulate math."""
    hid = 2 * emb_dim
    f32, bf16 = jnp.float32, jnp.bfloat16
    src, dst = edge_index[0], edge_index[1]
    h = _encode(packed["atom_tables"], x_int)
    for l in range(packed["w1_all"].shape[0]):
        eemb = _encode(packed["bond_tables"][l], edge_attr)
        hb = h.astype(bf16).astype(f32)
        msg = jnp.maximum(hb[src] + eemb, 0.0)
        aggr = jnp.zeros_like(h).at[dst].add(msg.astype(bf16).astype(f32))
        one_plus_eps = packed["shifts_all"][l, 2, 0]
        g = one_plus_eps * h + aggr
        w1 = packed["w1_all"][l, :emb_dim, :hid]
        w2 = packed["w2_all"][l, :hid, :emb_dim]
        sh1 = packed["shifts_all"][l, 0, :hid]
        sh2 = packed["shifts_all"][l, 1, :emb_dim]
        h1 = jnp.maximum(
            jnp.dot(g.astype(bf16), w1, preferred_element_type=f32) + sh1[None, :], 0.0)
        h = jnp.maximum(
            jnp.dot(h1.astype(bf16), w2, preferred_element_type=f32) + sh2[None, :], 0.0)
    return h


# ------------------------------- main ---------------------------------------- #

if __name__ == "__main__":
    N_NODES, N_EDGES, EMB_DIM, NUM_LAYERS = 16, 32, 32, 2

    key = jax.random.PRNGKey(0)
    k_params, k_x, k_src, k_dst, k_ea = jax.random.split(key, 5)

    params = make_params(k_params, NUM_LAYERS, EMB_DIM)
    packed = pack_params(params, EMB_DIM)

    x_int = jnp.stack(
        [jax.random.randint(jax.random.fold_in(k_x, f), (N_NODES,), 0, v)
         for f, v in enumerate(ATOM_VOCABS)], axis=1).astype(jnp.int32)
    edge_index = jnp.stack(
        [jax.random.randint(k_src, (N_EDGES,), 0, N_NODES),
         jax.random.randint(k_dst, (N_EDGES,), 0, N_NODES)], axis=0).astype(jnp.int32)
    edge_attr = jnp.stack(
        [jax.random.randint(jax.random.fold_in(k_ea, f), (N_EDGES,), 0, v)
         for f, v in enumerate(BOND_VOCABS)], axis=1).astype(jnp.int32)

    out = gnn_forward(packed, x_int, edge_index, edge_attr, EMB_DIM)
    out = jax.block_until_ready(out)
    assert out.shape == (N_NODES, EMB_DIM)

    # Tight check against a reference that uses the same bf16-operand math as the kernel.
    ref_bf16 = gnn_forward_bf16_ref(packed, x_int, edge_index, edge_attr, EMB_DIM)
    assert jnp.allclose(out, ref_bf16, atol=2e-3, rtol=2e-3), \
        "Pallas output != bf16-exact JAX reference"

    # Loose check against the full-f32 module semantics (bf16 MXU operands => ~1% error).
    ref_f32 = gnn_forward_ref(params, x_int, edge_index, edge_attr)
    rel = float(jnp.max(jnp.abs(out - ref_f32)) / (jnp.max(jnp.abs(ref_f32)) + 1e-6))
    assert rel < 5e-2, f"Pallas output too far from f32 reference (rel={rel})"

    print("KERNEL_OK")
</pallas_src>

<mosaic_0001>
module attributes {stable_mosaic.version = 11 : i64} {
  func.func @_gnn_fused_kernel(%arg0: i32, %arg1: memref<32x16xbf16, #tpu.memory_space<vmem>>, %arg2: memref<16x32xbf16, #tpu.memory_space<vmem>>, %arg3: memref<16x128xf32, #tpu.memory_space<vmem>>, %arg4: memref<1x32x128xf32, #tpu.memory_space<vmem>>, %arg5: memref<1x128x128xbf16, #tpu.memory_space<vmem>>, %arg6: memref<1x128x128xbf16, #tpu.memory_space<vmem>>, %arg7: memref<1x8x128xf32, #tpu.memory_space<vmem>>, %arg8: memref<16x128xf32, #tpu.memory_space<vmem>>) attributes {dimension_semantics = [#tpu.dimension_semantics<arbitrary>], iteration_bounds = array<i64: 2>, scalar_prefetch = 0 : i64, scratch_operands = 0 : i64, tpu.core_type = #tpu.core_type<tc>, window_params = [{pipeline_mode = #tpu.pipeline_mode<synchronous>, transform_indices = @transform_0, window_bounds = array<i64: 32, 16>}, {pipeline_mode = #tpu.pipeline_mode<synchronous>, transform_indices = @transform_1, window_bounds = array<i64: 16, 32>}, {pipeline_mode = #tpu.pipeline_mode<synchronous>, transform_indices = @transform_2, window_bounds = array<i64: 16, 128>}, {transform_indices = @transform_3, window_bounds = array<i64: 1, 32, 128>}, {transform_indices = @transform_4, window_bounds = array<i64: 1, 128, 128>}, {transform_indices = @transform_5, window_bounds = array<i64: 1, 128, 128>}, {transform_indices = @transform_6, window_bounds = array<i64: 1, 8, 128>}, {pipeline_mode = #tpu.pipeline_mode<synchronous>, transform_indices = @transform_7, window_bounds = array<i64: 16, 128>}]} {
    %c0_i32 = arith.constant 0 : i32
    %0 = arith.cmpi eq, %arg0, %c0_i32 : i32
    %1 = arith.extui %0 : i1 to i32
    %c0_i32_0 = arith.constant 0 : i32
    %2 = arith.cmpi ne, %1, %c0_i32_0 : i32
    scf.if %2 {
      %c0_30 = arith.constant 0 : index
      %c0_31 = arith.constant 0 : index
      %41 = vector.load %arg3[%c0_30, %c0_31] : memref<16x128xf32, #tpu.memory_space<vmem>>, vector<16x128xf32>
      %c0_32 = arith.constant 0 : index
      %c0_33 = arith.constant 0 : index
      %42 = vector.load %arg8[%c0_32, %c0_33] : memref<16x128xf32, #tpu.memory_space<vmem>>, vector<16x128xf32>
      tpu.vector_store %arg8[%c0_32, %c0_33], %41 {strides = array<i32>} : memref<16x128xf32, #tpu.memory_space<vmem>>, vector<16x128xf32>,
    } else {
    }
    %c0 = arith.constant 0 : index
    %c0_1 = arith.constant 0 : index
    %3 = vector.load %arg8[%c0, %c0_1] : memref<16x128xf32, #tpu.memory_space<vmem>>, vector<16x128xf32>
    %c0_2 = arith.constant 0 : index
    %c0_3 = arith.constant 0 : index
    %4 = vector.load %arg1[%c0_2, %c0_3] : memref<32x16xbf16, #tpu.memory_space<vmem>>, vector<32x16xbf16>
    %5 = arith.truncf %3 : vector<16x128xf32> to vector<16x128xbf16>
    %cst = arith.constant dense<0.000000e+00> : vector<32x128xf32>
    %6 = tpu.matmul %4, %5, %cst {dimension_numbers = #tpu.dot_dimension_numbers<[1], [0], [0], [1], [0, 0, 1, 1], [], []>} : vector<32x16xbf16>, vector<16x128xbf16>, vector<32x128xf32> -> vector<32x128xf32>
    %c0_4 = arith.constant 0 : index
    %c0_5 = arith.constant 0 : index
    %c0_6 = arith.constant 0 : index
    %7 = vector.load %arg4[%c0_4, %c0_5, %c0_6] : memref<1x32x128xf32, #tpu.memory_space<vmem>>, vector<1x32x128xf32>
    %8 = vector.shape_cast %7 : vector<1x32x128xf32> to vector<32x128xf32>
    %9 = arith.addf %6, %8 : vector<32x128xf32>
    %cst_7 = arith.constant 0.000000e+00 : f32
    %10 = vector.broadcast %cst_7 : f32 to vector<32x128xf32>
    %11 = arith.maximumf %9, %10 : vector<32x128xf32>
    %c0_8 = arith.constant 0 : index
    %c0_9 = arith.constant 0 : index
    %12 = vector.load %arg2[%c0_8, %c0_9] : memref<16x32xbf16, #tpu.memory_space<vmem>>, vector<16x32xbf16>
    %13 = arith.truncf %11 : vector<32x128xf32> to vector<32x128xbf16>
    %cst_10 = arith.constant dense<0.000000e+00> : vector<16x128xf32>
    %14 = tpu.matmul %12, %13, %cst_10 {dimension_numbers = #tpu.dot_dimension_numbers<[1], [0], [0], [1], [0, 0, 1, 1], [], []>} : vector<16x32xbf16>, vector<32x128xbf16>, vector<16x128xf32> -> vector<16x128xf32>
    %c0_11 = arith.constant 0 : index
    %c2 = arith.constant 2 : index
    %c0_12 = arith.constant 0 : index
    %15 = vector.load %arg7[%c0_11, %c2, %c0_12] : memref<1x8x128xf32, #tpu.memory_space<vmem>>, vector<1x1x128xf32>
    %16 = vector.shape_cast %15 : vector<1x1x128xf32> to vector<1x128xf32>
    %17 = vector.broadcast %16 : vector<1x128xf32> to vector<16x128xf32>
    %18 = arith.mulf %17, %3 : vector<16x128xf32>
    %19 = arith.addf %18, %14 : vector<16x128xf32>
    %20 = arith.truncf %19 : vector<16x128xf32> to vector<16x128xbf16>
    %c0_13 = arith.constant 0 : index
    %c0_14 = arith.constant 0 : index
    %c0_15 = arith.constant 0 : index
    %21 = vector.load %arg5[%c0_13, %c0_14, %c0_15] : memref<1x128x128xbf16, #tpu.memory_space<vmem>>, vector<1x128x128xbf16>
    %22 = vector.shape_cast %21 : vector<1x128x128xbf16> to vector<128x128xbf16>
    %cst_16 = arith.constant dense<0.000000e+00> : vector<16x128xf32>
    %23 = tpu.matmul %20, %22, %cst_16 {dimension_numbers = #tpu.dot_dimension_numbers<[1], [0], [0], [1], [0, 0, 1, 1], [], []>} : vector<16x128xbf16>, vector<128x128xbf16>, vector<16x128xf32> -> vector<16x128xf32>
    %c0_17 = arith.constant 0 : index
    %c0_18 = arith.constant 0 : index
    %c0_19 = arith.constant 0 : index
    %24 = vector.load %arg7[%c0_17, %c0_18, %c0_19] : memref<1x8x128xf32, #tpu.memory_space<vmem>>, vector<1x1x128xf32>
    %25 = vector.shape_cast %24 : vector<1x1x128xf32> to vector<1x128xf32>
    %26 = vector.broadcast %25 : vector<1x128xf32> to vector<16x128xf32>
    %27 = arith.addf %23, %26 : vector<16x128xf32>
    %cst_20 = arith.constant 0.000000e+00 : f32
    %28 = vector.broadcast %cst_20 : f32 to vector<16x128xf32>
    %29 = arith.maximumf %27, %28 : vector<16x128xf32>
    %30 = arith.truncf %29 : vector<16x128xf32> to vector<16x128xbf16>
    %c0_21 = arith.constant 0 : index
    %c0_22 = arith.constant 0 : index
    %c0_23 = arith.constant 0 : index
    %31 = vector.load %arg6[%c0_21, %c0_22, %c0_23] : memref<1x128x128xbf16, #tpu.memory_space<vmem>>, vector<1x128x128xbf16>
    %32 = vector.shape_cast %31 : vector<1x128x128xbf16> to vector<128x128xbf16>
    %cst_24 = arith.constant dense<0.000000e+00> : vector<16x128xf32>
    %33 = tpu.matmul %30, %32, %cst_24 {dimension_numbers = #tpu.dot_dimension_numbers<[1], [0], [0], [1], [0, 0, 1, 1], [], []>} : vector<16x128xbf16>, vector<128x128xbf16>, vector<16x128xf32> -> vector<16x128xf32>
    %c0_25 = arith.constant 0 : index
    %c1 = arith.constant 1 : index
    %c0_26 = arith.constant 0 : index
    %34 = vector.load %arg7[%c0_25, %c1, %c0_26] : memref<1x8x128xf32, #tpu.memory_space<vmem>>, vector<1x1x128xf32>
    %35 = vector.shape_cast %34 : vector<1x1x128xf32> to vector<1x128xf32>
    %36 = vector.broadcast %35 : vector<1x128xf32> to vector<16x128xf32>
    %37 = arith.addf %33, %36 : vector<16x128xf32>
    %cst_27 = arith.constant 0.000000e+00 : f32
    %38 = vector.broadcast %cst_27 : f32 to vector<16x128xf32>
    %39 = arith.maximumf %37, %38 : vector<16x128xf32>
    %c0_28 = arith.constant 0 : index
    %c0_29 = arith.constant 0 : index
    %40 = vector.load %arg8[%c0_28, %c0_29] : memref<16x128xf32, #tpu.memory_space<vmem>>, vector<16x128xf32>
    tpu.vector_store %arg8[%c0_28, %c0_29], %39 {strides = array<i32>} : memref<16x128xf32, #tpu.memory_space<vmem>>, vector<16x128xf32>,
    return
  }
  func.func @transform_0(%arg0: i32) -> (i32, i32) {
    %c0_i32 = arith.constant 0 : i32
    %c0_i32_0 = arith.constant 0 : i32
    %c0_i32_1 = arith.constant 0 : i32
    return %c0_i32, %c0_i32_0 : i32, i32
  }
  func.func @transform_1(%arg0: i32) -> (i32, i32) {
    %c0_i32 = arith.constant 0 : i32
    %c0_i32_0 = arith.constant 0 : i32
    %c0_i32_1 = arith.constant 0 : i32
    return %c0_i32, %c0_i32_0 : i32, i32
  }
  func.func @transform_2(%arg0: i32) -> (i32, i32) {
    %c0_i32 = arith.constant 0 : i32
    %c0_i32_0 = arith.constant 0 : i32
    %c0_i32_1 = arith.constant 0 : i32
    return %c0_i32, %c0_i32_0 : i32, i32
  }
  func.func @transform_3(%arg0: i32) -> (i32, i32, i32) {
    %c0_i32 = arith.constant 0 : i32
    %c0_i32_0 = arith.constant 0 : i32
    %c0_i32_1 = arith.constant 0 : i32
    return %arg0, %c0_i32, %c0_i32_0 : i32, i32, i32
  }
  func.func @transform_4(%arg0: i32) -> (i32, i32, i32) {
    %c0_i32 = arith.constant 0 : i32
    %c0_i32_0 = arith.constant 0 : i32
    %c0_i32_1 = arith.constant 0 : i32
    return %arg0, %c0_i32, %c0_i32_0 : i32, i32, i32
  }
  func.func @transform_5(%arg0: i32) -> (i32, i32, i32) {
    %c0_i32 = arith.constant 0 : i32
    %c0_i32_0 = arith.constant 0 : i32
    %c0_i32_1 = arith.constant 0 : i32
    return %arg0, %c0_i32, %c0_i32_0 : i32, i32, i32
  }
  func.func @transform_6(%arg0: i32) -> (i32, i32, i32) {
    %c0_i32 = arith.constant 0 : i32
    %c0_i32_0 = arith.constant 0 : i32
    %c0_i32_1 = arith.constant 0 : i32
    return %arg0, %c0_i32, %c0_i32_0 : i32, i32, i32
  }
  func.func @transform_7(%arg0: i32) -> (i32, i32) {
    %c0_i32 = arith.constant 0 : i32
    %c0_i32_0 = arith.constant 0 : i32
    %c0_i32_1 = arith.constant 0 : i32
    return %c0_i32, %c0_i32_0 : i32, i32
  }
}

</mosaic_0001>

<bundles_post_ra>
// kernel: gnn_forward.1
= control target key start
LH: loop header
LB: loop body
LE: loop exit
PB: predicated region body
PF: predicated region fallthrough
CT: control target
= control target key end

     0   :  { %12 = vsyncpa [#allocation3], 0  ;;  %s1030_s24 = smov 0   ;;  %s1159_s0 = inlined_call_operand.vmem [shape: bf16[32,16], index: 0, kind: input, shape index: {}]   ;;  %s1160_s1 = inlined_call_operand.vmem [shape: bf16[16,32], index: 1, kind: input, shape index: {}]   ;;  %s1161_s2 = inlined_call_operand.vmem [shape: f32[16,128], index: 2, kind: input, shape index: {}]   ;;  %s1162_s3 = inlined_call_operand.vmem [shape: f32[2,32,128], index: 3, kind: input, shape index: {}]   ;;  %s1163_s4 = inlined_call_operand.vmem [shape: bf16[2,128,128], index: 4, kind: input, shape index: {}]   ;;  %s1164_s5 = inlined_call_operand.vmem [shape: bf16[2,128,128], index: 5, kind: input, shape index: {}]   ;;  %s1165_s6 = inlined_call_operand.vmem [shape: f32[2,8,128], index: 6, kind: input, shape index: {}]   ;;  %s1166_s7 = inlined_call_operand.hbm [shape: f32[16,128], index: 7, kind: output, shape index: {}]  }
   0x1 LB: > { %s1036_s25 = sadd.s32 4294967295, %s983_s24   ;;  %p790_p0 = scmp.ge.s32.totalorder %s983_s24, 1  ;;  %s983_s24 = sphi %s1030_s24, %s18_s24  }
   0x2   : > { %p262_p1 = scmp.lt.s32.totalorder %s983_s24, 3 }
   0x4   : > { %p263_p2 = pnand %p790_p0, %p262_p1 }
   0x5   : > { %p303_p3 = scmp.lt.s32.totalorder (!%p263_p2), %s1036_s25, 1  ;;  %p798_p4 = scmp.ne.s32.totalorder (!%p263_p2), %s1036_s25, 0 }
   0x6   : > { %266 = sbr.rel (%p263_p2) target bundleno = 929 (0x3a1), region = 48 }
   0xd   : > { %s304_s26 = scalar_select %p303_p3, %s1036_s25, 1 }
   0xe   : > { %326 = sbr.rel (%p798_p4) target bundleno = 21 (0x15), region = 52  ;;  %v327_v0 = vld [vmem:[%s1161_s2] sm:$0xff] (!%p798_p4)  ;;  %v328_v1 = vld [vmem:[%s1161_s2 + $0x8] sm:$0xff] (!%p798_p4) }
   0xf   : > { %s828_s27 = sshll.u32 %s304_s26, 5  ;;  %s829_s28 = sshll.u32 %s304_s26, 6  ;;  %329 = vst [vmem:[#allocation2] sm:$0xff] (!%p798_p4), %v327_v0  ;;  %330 = vst [vmem:[#allocation2 + $0x8] sm:$0xff] (!%p798_p4), %v328_v1 }
  0x10   : > { %s1045_s8 = scalar_lea.vmem %s1162_s3, %s828_s27  ;;  %s1050_s11 = scalar_lea.vmem %s1163_s4, %s829_s28 }
  0x11   : > { %s1055_s14 = scalar_lea.vmem %s1164_s5, %s829_s28  ;;  %s797_s15 = sshll.u32 %s304_s26, 3 }
  0x12   : > { %s1060_s18 = scalar_lea.vmem %s1165_s6, %s797_s15 }
  0x15 PF: > { %vm352_vm0 = vcmask 130048   ;;  %v928_v5 = vld [vmem:[%s1159_s0] sm:$0xff]   ;;  %v929_v6 = vld [vmem:[%s1159_s0 + $0x8] sm:$0xff]   ;;  %v985_v7 = vmov 0.0   ;;  %vm986_vm1 = vmmov 0   ;;  %v933_v10 = vld [vmem:[%s1050_s11 + $0x10] sm:$0xff]  }
  0x16   : > { %v1069_v2 = vld [vmem:[#allocation2] sm:$0xff]  ;;  %v1071_v3 = vld [vmem:[#allocation2 + $0x8] sm:$0xff]  ;;  %857 = vmatprep.mubr.msk.bf16.mxu0 %vm352_vm0, %v928_v5  ;;  %861 = vmatprep.subr.bf16.mxu1 %v985_v7  ;;  %v934_v11 = vld [vmem:[%s1050_s11 + $0x18] sm:$0xff]   ;;  %vm421_vm2 = vcmask 261120   ;;  %p913_p5 = scmp.eq.s32.totalorder %s1036_s25, 1 }
  0x17   : > { %v337_v4 = vpack.c.bf16 %v1071_v3, %v1069_v2  ;;  %865 = vmatprep.mubr.msk.bf16.mxu1 %vm986_vm1, %v985_v7  ;;  %v931_v8 = vld [vmem:[%s1050_s11] sm:$0xff]   ;;  %v932_v9 = vld [vmem:[%s1050_s11 + $0x8] sm:$0xff]   ;;  %v340_v14 = vld [vmem:[%s1045_s8 + $0x10] sm:$0xff] }
  0x18   : > { %v935_v12 = vld [vmem:[%s1050_s11 + $0x20] sm:$0xff]   ;;  %v936_v13 = vld [vmem:[%s1050_s11 + $0x28] sm:$0xff]   ;;  %v341_v17 = vld [vmem:[%s1045_s8 + $0x18] sm:$0xff] }
  0x19   : > { %855 = vmatprep.subr.bf16.mxu0 %v337_v4  ;;  %v338_v15 = vld [vmem:[%s1045_s8] sm:$0xff]  ;;  %v339_v20 = vld [vmem:[%s1045_s8 + $0x8] sm:$0xff]  ;;  %v937_v33 = vld [vmem:[%s1050_s11 + $0x30] sm:$0xff]   ;;  %s987_s8 = smov [#allocation2]  }
  0x1a   : > { %856 = vmatpush3.bf16.msra.mxu0 %v337_v4  ;;  %v930_v32 = vld [vmem:[%s1160_s1] sm:$0xff]   ;;  %v938_v34 = vld [vmem:[%s1050_s11 + $0x38] sm:$0xff]   ;;  %v940_v36 = vld [vmem:[%s1055_s14 + $0x8] sm:$0xff]   ;;  %s709_s9 = sshll.u32 %s987_s8, 4  ;;  %s710_s9 = int_to_ptr.vmem [resolvable:$true] %s709_s9 }
  0x1b   : > { %869 = vmatprep.subr.bf16.mxu0 %v985_v7  ;;  %v939_v35 = vld [vmem:[%s1055_s14] sm:$0xff]   ;;  %v941_v37 = vld [vmem:[%s1055_s14 + $0x10] sm:$0xff]   ;;  %v942_v38 = vld [vmem:[%s1055_s14 + $0x18] sm:$0xff]   ;;  %s947_s10 = scalar_lea.vmem %s710_s9, 256  ;;  %p954_p9 = scmp.lt.s32.totalorder %s710_s9, %s710_s9 }
  0x1c   : > { %v943_v39 = vld [vmem:[%s1055_s14 + $0x20] sm:$0xff]   ;;  %v944_v40 = vld [vmem:[%s1055_s14 + $0x28] sm:$0xff]   ;;  %v945_v51 = vld [vmem:[%s1055_s14 + $0x30] sm:$0xff]   ;;  %p948_p6 = scmp.ne.s32.totalorder %s710_s9, %s947_s10  ;;  %p955_p10 = scmp.lt.s32.totalorder %s947_s10, %s947_s10 }
  0x1d   : > { %858 = vmatmul.mubr.msk.bf16.vlgmr.msra.gmra.mrb[0].mxu0 %vm352_vm0, %v929_v6  ;;  %v805_v41 = vld [vmem:[%s1060_s18 + $0x2] ss:$0 sm:$0xff]  ;;  %v946_v52 = vld [vmem:[%s1055_s14 + $0x38] sm:$0xff]   ;;  %v806_v53 = vld [vmem:[%s1060_s18] ss:$0 sm:$0xff] }
  0x1e   : > { %885 = vmatprep.mubr.msk.bf16.mxu0 %vm986_vm1, %v985_v7  ;;  %870 = vmatpush3.bf16.msra.mxu0 %v931_v8  ;;  %v471_v42 = vmul.f32 %v805_v41, %v1069_v2  ;;  %v472_v43 = vmul.f32 %v805_v41, %v1071_v3  ;;  %v815_v63 = vld [vmem:[%s1060_s18 + $0x1] ss:$0 sm:$0xff]  ;;  %p949_p7 = pnand %p948_p6, %p913_p5  ;;  %p956_p11 = por %p955_p10, %p954_p9 }
  0x1f   : > { %871 = vmatprep.subr.bf16.mxu0 %v985_v7 }
  0x20   : > { %p950_p8 = pneg %p949_p7 }
  0x22   : > { %872 = vmatpush3.bf16.msra.mxu0 %v932_v9  ;;  %p957_p12 = pnand %p956_p11, %p950_p8 }
  0x23   : > { %873 = vmatprep.subr.bf16.mxu0 %v985_v7 }
  0x26   : > { %874 = vmatpush3.bf16.msra.mxu0 %v933_v10 }
  0x27   : > { %875 = vmatprep.subr.bf16.mxu0 %v985_v7 }
  0x2a   : > { %876 = vmatpush3.bf16.msra.mxu0 %v934_v11 }
  0x2b   : > { %877 = vmatprep.subr.bf16.mxu0 %v985_v7 }
  0x2e   : > { %878 = vmatpush3.bf16.msra.mxu0 %v935_v12 }
  0x2f   : > { %879 = vmatprep.subr.bf16.mxu0 %v985_v7 }
  0x32   : > { %880 = vmatpush3.bf16.msra.mxu0 %v936_v13 }
  0x33   : > { %881 = vmatprep.subr.bf16.mxu0 %v985_v7 }
  0x36   : > { %882 = vmatpush3.bf16.msra.mxu0 %v937_v33 }
  0x37   : > { %883 = vmatprep.subr.bf16.mxu0 %v985_v7 }
  0x3a   : > { %884 = vmatpush3.bf16.msra.mxu0 %v938_v34 }
  0xf0   : > { %v859_v16 = vpop.f32.mrb[0].mxu0 }
  0xf1   : > { %v402_v18 = vadd.f32 %v859_v16, %v340_v14  ;;  %v393_v19 = vpop.f32.mrb[1].mxu0 }
  0xf2   : > { %v394_v21 = vadd.f32 %v393_v19, %v338_v15  ;;  %v860_v22 = vpop.f32.mrb[2].mxu0 }
  0xf3   : > { %v405_v23 = vadd.f32 %v860_v22, %v341_v17  ;;  %v396_v24 = vpop.f32.mrb[3].mxu0  ;;  %v410_v26 = vmax.f32 %v402_v18, 0.0 }
  0xf4   : > { %v397_v25 = vadd.f32 %v396_v24, %v339_v20  ;;  %v408_v28 = vmax.f32 %v394_v21, 0.0 }
  0xf5   : > { %v411_v27 = vmax.f32 %v405_v23, 0.0 }
  0xf6   : > { %v409_v29 = vmax.f32 %v397_v25, 0.0 }
  0xf7   : > { %v415_v30 = vpack.c.bf16 %v411_v27, %v410_v26 }
  0xf8   : > { %v414_v31 = vpack.c.bf16 %v409_v29, %v408_v28 }
  0xfa   : > { %862 = vmatpush3.bf16.msra.mxu1 %v414_v31 }
  0xfb   : > { %863 = vmatprep.subr.bf16.mxu1 %v985_v7 }
  0xfe   : > { %864 = vmatpush3.bf16.msra.mxu1 %v415_v30 }
  0xff   : > { %889 = vmatprep.subr.bf16.mxu1 %v985_v7 }
 0x101   : > { %866 = vmatmul.mubr.msk.bf16.vlgmr.msra.gmra.mrb[0].mxu1 %vm421_vm2, %v930_v32 }
 0x102   : > { %905 = vmatprep.mubr.msk.bf16.mxu1 %vm986_vm1, %v985_v7  ;;  %890 = vmatpush3.bf16.msra.mxu1 %v939_v35 }
 0x103   : > { %891 = vmatprep.subr.bf16.mxu1 %v985_v7 }
 0x106   : > { %892 = vmatpush3.bf16.msra.mxu1 %v940_v36 }
 0x107   : > { %893 = vmatprep.subr.bf16.mxu1 %v985_v7 }
 0x10a   : > { %894 = vmatpush3.bf16.msra.mxu1 %v941_v37 }
 0x10b   : > { %895 = vmatprep.subr.bf16.mxu1 %v985_v7 }
 0x10e   : > { %896 = vmatpush3.bf16.msra.mxu1 %v942_v38 }
 0x10f   : > { %897 = vmatprep.subr.bf16.mxu1 %v985_v7 }
 0x112   : > { %898 = vmatpush3.bf16.msra.mxu1 %v943_v39 }
 0x113   : > { %899 = vmatprep.subr.bf16.mxu1 %v985_v7 }
 0x116   : > { %900 = vmatpush3.bf16.msra.mxu1 %v944_v40 }
 0x117   : > { %901 = vmatprep.subr.bf16.mxu1 %v985_v7 }
 0x11a   : > { %902 = vmatpush3.bf16.msra.mxu1 %v945_v51 }
 0x11b   : > { %903 = vmatprep.subr.bf16.mxu1 %v985_v7 }
 0x11e   : > { %904 = vmatpush3.bf16.msra.mxu1 %v946_v52 }
 0x1d4   : > { %v459_v44 = vpop.f32.mrb[0].mxu1 }
 0x1d5   : > { %v867_v45 = vpop.f32.mrb[1].mxu1  ;;  %v473_v47 = vadd.f32 %v471_v42, %v459_v44 }
 0x1d6   : > { %v462_v46 = vpop.f32.mrb[2].mxu1 }
 0x1d7   : > { %v474_v48 = vadd.f32 %v472_v43, %v462_v46  ;;  %v868_v49 = vpop.f32.mrb[3].mxu1 }
 0x1d9   : > { %v475_v50 = vpack.c.bf16 %v474_v48, %v473_v47 }
 0x1db   : > { %886 = vmatmul.mubr.bf16.vlgmr.msra.gmra.mrb[4].mxu0 %v475_v50 }
 0x2ae   : > { %v579_v54 = vpop.f32.mrb[4].mxu0 }
 0x2af   : > { %v580_v55 = vadd.f32 %v806_v53, %v579_v54  ;;  %v887_v56 = vpop.f32.mrb[5].mxu0 }
 0x2b0   : > { %v582_v57 = vpop.f32.mrb[6].mxu0 }
 0x2b1   : > { %v583_v58 = vadd.f32 %v806_v53, %v582_v57  ;;  %v888_v59 = vpop.f32.mrb[7].mxu0  ;;  %v586_v60 = vmax.f32 %v580_v55, 0.0 }
 0x2b3   : > { %v587_v61 = vmax.f32 %v583_v58, 0.0 }
 0x2b5   : > { %v588_v62 = vpack.c.bf16 %v587_v61, %v586_v60 }
 0x2b7   : > { %906 = vmatmul.mubr.bf16.vlgmr.msra.gmra.mrb[4].mxu1 %v588_v62 }
 0x38a   : > { %v692_v0 = vpop.f32.mrb[4].mxu1 }
 0x38b   : > { %v693_v1 = vadd.f32 %v815_v63, %v692_v0  ;;  %v907_v2 = vpop.f32.mrb[5].mxu1 }
 0x38c   : > { %v695_v3 = vpop.f32.mrb[6].mxu1 }
 0x38d   : > { %v699_v4 = vmax.f32 %v693_v1, 0.0  ;;  %v696_v5 = vadd.f32 %v815_v63, %v695_v3  ;;  %v908_v6 = vpop.f32.mrb[7].mxu1 }
 0x38f   : > { %701 = vst [vmem:[#allocation2] sm:$0xff] %v699_v4  ;;  %v700_v7 = vmax.f32 %v696_v5, 0.0 }
 0x391   : > { %702 = vst [vmem:[#allocation2 + $0x8] sm:$0xff] %v700_v7 }
 0x392   : > { %960 = shalt.err (!%p957_p12)
}
 0x393   : > { %s961_s13 = scalar_lea.hbm %s1166_s7, 256 }
 0x394   : > { %p962_p13 = scmp.ne.s32.totalorder %s1166_s7, %s961_s13  ;;  %p967_p2 = scmp.lt.u32.totalorder %s961_s13, %s1166_s7 }
 0x396   : > { %p963_p0 = pnand %p962_p13, %p913_p5 }
 0x398   : > { %p964_p1 = pneg %p963_p0 }
 0x39a   : > { %p969_p3 = pnand %p967_p2, %p964_p1 }
 0x39c   : > { %972 = shalt.err (!%p969_p3)
}
 0x39d   : > { %s988_s18 = smov 128   ;;  %s989_s19 = smov 8  }
 0x39e   : > { %910 = dma.vmem_to_hbm [thread:$0]  (%p913_p5), %s710_s9, 256, %s1166_s7, [#allocation3], %s988_s18, %s988_s18, %s989_s19  }
 0x39f   : > { %978 = dma.done.wait (%p913_p5), [#allocation3], 256  }
 0x3a0   : > { %980 = vsyncadd (%p913_p5), [#allocation3], 4294967040 }
 0x3a1 PF: > { %s18_s24 = sadd.s32 1, %s983_s24  }
 0x3a2   : > { %p15_p4 = scmp.ge.s32.totalorder %s18_s24, 4  }
 0x3a4   :  { %17 = sbr.rel (!%p15_p4) target bundleno = 1 (0x1), region = 88 }
 0x3ab   :  { %725 = vsyncpa [#allocation3], 1 }
 0x3ac   :  { %727 = vsyncpa [#allocation3 + $0x1], 1 }

</bundles_post_ra>
